<compile_context>
chip_gen: v7x
topology: tpu7x:2x2x1
jax: 0.10.0
libtpu: 0.0.40
codegen_flags: <defaults>
</compile_context>

<pallas_src>
import functools

import jax
import jax.numpy as jnp
from jax.experimental import pallas as pl
from jax.experimental.pallas import tpu as pltpu

_HALO = 128  # lane-aligned halo width; requires K - 1 <= 128


def _round_up(x: int, m: int) -> int:
    return ((x + m - 1) // m) * m


def _vmem_limit_bytes(per_step_bytes: int) -> int:
    """Scoped-VMEM request: enough for the working set, capped at 75% of physical."""
    try:
        physical = int(getattr(pltpu.get_tpu_info(), "vmem_capacity_bytes", 64 << 20))
    except Exception:
        physical = 64 << 20  # conservative (v7x) fallback
    want = max(2 * per_step_bytes + (8 << 20), 32 << 20)
    return max(16 << 20, min(want, int(physical * 0.75)))


def conv1d_relu_kernel(x_ref, xh_ref, w_ref, b_ref, o_ref, xwin_ref):
    # x_ref   : (1, C_in, TL)        current input time tile
    # xh_ref  : (1, C_in, HALO)      next HALO input columns (halo tile)
    # w_ref   : (K, C_out, C_in)     weight, tap-major (leading-axis tap slices)
    # b_ref   : (C_out, 1)           f32 bias
    # o_ref   : (1, C_out, TL)       lane-dense output tile (TL % 128 == 0)
    # xwin_ref: (C_in, TL + HALO)    VMEM staging for the haloed window
    K = w_ref.shape[0]
    TL = o_ref.shape[-1]

    # Stage the haloed window once; both stores are lane-aligned.
    xwin_ref[:, :TL] = x_ref[0]
    xwin_ref[:, TL:] = xh_ref[0]

    # K accumulating MXU matmuls (contraction over C_in), f32 accumulation.
    acc = jnp.dot(w_ref[0], xwin_ref[:, :TL], preferred_element_type=jnp.float32)
    for j in range(1, K):  # static unroll, K is small
        acc = acc + jnp.dot(w_ref[j], xwin_ref[:, j:j + TL],
                            preferred_element_type=jnp.float32)

    # Epilogue in f32: bias broadcast + ReLU (safe on v5e: no bf16 VPU needed).
    acc = acc + b_ref[...]
    o_ref[0] = jnp.maximum(acc, 0.0).astype(o_ref.dtype)


@functools.partial(jax.jit, static_argnames=("time_tile", "compute_dtype"))
def conv_block(x, weight, bias, *, time_tile=1024, compute_dtype=None):
    """ConvBlock forward: Conv1d('VALID', stride=1, dilation=1) + ReLU.

    x:      (B, C_in, N)
    weight: (C_out, C_in, K)
    bias:   (C_out,)
    returns (B, C_out, N - K + 1), dtype == x.dtype

    compute_dtype: optional MXU operand dtype (e.g. jnp.bfloat16; beneficial on
    v5e/v6e/v7x since the kernel is HBM-bound). Pass x already in that dtype to
    avoid even the single cast pass. Accumulation/epilogue stay f32.
    """
    B, C_in, N = x.shape
    C_out, C_in_w, K = weight.shape
    assert C_in_w == C_in
    L = N - K + 1
    assert L >= 1, "input shorter than kernel"
    assert K - 1 <= _HALO, "kernel taps must fit in one 128-column halo block"

    # Lane-dense time tile: multiple of 128, no larger than the padded output.
    TL = min(_round_up(time_tile, 128), _round_up(L, 128))
    num_t = pl.cdiv(L, TL)

    cdt = jnp.dtype(compute_dtype) if compute_dtype is not None else x.dtype
    x_c = x.astype(cdt)                                  # no-op if already cdt
    # (K, C_out, C_in): tap-major so w_ref[j] is a contiguous (C_out, C_in) slice.
    w_t = jnp.transpose(weight, (2, 0, 1)).astype(cdt)
    b2 = bias.reshape(C_out, 1).astype(jnp.float32)

    tl_blocks = TL // _HALO
    max_hb = pl.cdiv(N, _HALO) - 1                       # last valid 128-block of x

    def x_map(b, t):
        return (b, 0, t)

    def halo_map(b, t):
        # 128-wide block starting at the next tile boundary; clamp at the end of x.
        # When clamped, the halo only feeds output columns >= L (masked on store).
        return (b, 0, jnp.minimum((t + 1) * tl_blocks, max_hb))

    def w_map(b, t):
        return (0, 0, 0)

    def b_map(b, t):
        return (0, 0)

    def o_map(b, t):
        return (b, 0, t)

    esize = jnp.dtype(cdt).itemsize
    per_step = (2 * C_in * TL * esize            # double-buffered main input tile
                + 2 * C_in * _HALO * esize       # double-buffered halo tile
                + 2 * K * C_out * C_in * esize   # resident weights
                + 2 * C_out * 4                  # bias
                + 2 * C_out * TL * 4             # double-buffered output tile
                + C_in * (TL + _HALO) * esize)   # staging scratch
    vmem_limit = _vmem_limit_bytes(per_step)

    out_itemsize = jnp.dtype(x.dtype).itemsize
    cost = pl.CostEstimate(
        flops=2 * B * C_out * L * C_in * K,
        bytes_accessed=(x_c.size * esize + w_t.size * esize + C_out * 4
                        + B * C_out * L * out_itemsize),
        transcendentals=0,
    )

    return pl.pallas_call(
        conv1d_relu_kernel,
        out_shape=jax.ShapeDtypeStruct((B, C_out, L), x.dtype),
        grid_spec=pltpu.PrefetchScalarGridSpec(
            num_scalar_prefetch=0,
            grid=(B, num_t),
            in_specs=[
                pl.BlockSpec((1, C_in, TL), x_map),       # main tile
                pl.BlockSpec((1, C_in, _HALO), halo_map),  # halo tile (same array)
                pl.BlockSpec((K, C_out, C_in), w_map),
                pl.BlockSpec((C_out, 1), b_map),
            ],
            out_specs=pl.BlockSpec((1, C_out, TL), o_map),
            scratch_shapes=[pltpu.VMEM((C_in, TL + _HALO), cdt)],
        ),
        compiler_params=pltpu.CompilerParams(
            dimension_semantics=("parallel", "parallel"),
            vmem_limit_bytes=vmem_limit),
        cost_estimate=cost,
    )(x_c, x_c, w_t, b2)


def reference(x, weight, bias):
    # Pure-JAX reference: conv1d 'VALID' + ReLU (NCW / OIW, matching PyTorch).
    y = jax.lax.conv_general_dilated(
        x, weight, window_strides=(1,), padding="VALID",
        dimension_numbers=("NCH", "OIH", "NCH"))
    return jnp.maximum(y + bias.reshape(1, -1, 1), 0.0)


if __name__ == "__main__":
    key = jax.random.PRNGKey(0)
    # L = 296 -> with time_tile=128: 3 time tiles, the last one ragged (masked
    # store); C_out = 6 exercises the non-multiple-of-8 output channel path.
    B, C_in, C_out, N, K = 2, 4, 6, 300, 5

    kx, kw, kb = jax.random.split(key, 3)
    x = jax.random.normal(kx, (B, C_in, N), dtype=jnp.float32)
    # Deterministic PyTorch-like init: uniform(-bound, bound), bound = 1/sqrt(C_in*K)
    bound = 1.0 / jnp.sqrt(jnp.float32(C_in * K))
    weight = jax.random.uniform(kw, (C_out, C_in, K), jnp.float32, -bound, bound)
    bias = jax.random.uniform(kb, (C_out,), jnp.float32, -bound, bound)

    ref = reference(x, weight, bias)

    # f32 path, small 128-wide tiles (multi-tile grid + ragged masked last block).
    out = jax.block_until_ready(conv_block(x, weight, bias, time_tile=128))
    assert out.shape == (B, C_out, N - K + 1)
    assert jnp.allclose(out, ref, atol=1e-4, rtol=1e-4), "f32 (tiled) mismatch"

    # f32 path, default big tile (single tile covering the whole time axis).
    out_big = jax.block_until_ready(conv_block(x, weight, bias))
    assert jnp.allclose(out_big, ref, atol=1e-4, rtol=1e-4), "f32 (big tile) mismatch"

    # bf16 operand path (beneficial on v5e/v6e/v7x), f32 accumulate + f32 epilogue.
    out_bf16 = jax.block_until_ready(
        conv_block(x, weight, bias, time_tile=128, compute_dtype=jnp.bfloat16))
    assert out_bf16.shape == (B, C_out, N - K + 1)
    assert jnp.allclose(out_bf16, ref, atol=5e-2, rtol=5e-2), "bf16 mismatch"

    print("KERNEL_OK")
</pallas_src>

<mosaic_0001>
module attributes {stable_mosaic.version = 11 : i64} {
  func.func @conv1d_relu_kernel(%arg0: i32, %arg1: i32, %arg2: memref<1x4x128xf32, #tpu.memory_space<vmem>>, %arg3: memref<1x4x128xf32, #tpu.memory_space<vmem>>, %arg4: memref<5x6x4xf32, #tpu.memory_space<vmem>>, %arg5: memref<6x1xf32, #tpu.memory_space<vmem>>, %arg6: memref<1x6x128xf32, #tpu.memory_space<vmem>>, %arg7: memref<4x256xf32, #tpu.memory_space<vmem>>) attributes {dimension_semantics = [#tpu.dimension_semantics<parallel>, #tpu.dimension_semantics<parallel>], iteration_bounds = array<i64: 2, 3>, scalar_prefetch = 0 : i64, scratch_operands = 1 : i64, tpu.core_type = #tpu.core_type<tc>, window_params = [{transform_indices = @transform_0, window_bounds = array<i64: 1, 4, 128>}, {transform_indices = @transform_1, window_bounds = array<i64: 1, 4, 128>}, {pipeline_mode = #tpu.pipeline_mode<synchronous>, transform_indices = @transform_2, window_bounds = array<i64: 5, 6, 4>}, {pipeline_mode = #tpu.pipeline_mode<synchronous>, transform_indices = @transform_3, window_bounds = array<i64: 6, 1>}, {transform_indices = @transform_4, window_bounds = array<i64: 1, 6, 128>}]} {
    %c0 = arith.constant 0 : index
    %c0_0 = arith.constant 0 : index
    %c0_1 = arith.constant 0 : index
    %0 = vector.load %arg2[%c0, %c0_0, %c0_1] : memref<1x4x128xf32, #tpu.memory_space<vmem>>, vector<1x4x128xf32>
    %1 = vector.shape_cast %0 : vector<1x4x128xf32> to vector<4x128xf32>
    %c0_2 = arith.constant 0 : index
    %c0_3 = arith.constant 0 : index
    %2 = vector.load %arg7[%c0_2, %c0_3] : memref<4x256xf32, #tpu.memory_space<vmem>>, vector<4x128xf32>
    tpu.vector_store %arg7[%c0_2, %c0_3], %1 {strides = array<i32>} : memref<4x256xf32, #tpu.memory_space<vmem>>, vector<4x128xf32>,
    %c0_4 = arith.constant 0 : index
    %c0_5 = arith.constant 0 : index
    %c0_6 = arith.constant 0 : index
    %3 = vector.load %arg3[%c0_4, %c0_5, %c0_6] : memref<1x4x128xf32, #tpu.memory_space<vmem>>, vector<1x4x128xf32>
    %4 = vector.shape_cast %3 : vector<1x4x128xf32> to vector<4x128xf32>
    %c0_7 = arith.constant 0 : index
    %c128 = arith.constant 128 : index
    %5 = vector.load %arg7[%c0_7, %c128] : memref<4x256xf32, #tpu.memory_space<vmem>>, vector<4x128xf32>
    tpu.vector_store %arg7[%c0_7, %c128], %4 {strides = array<i32>} : memref<4x256xf32, #tpu.memory_space<vmem>>, vector<4x128xf32>,
    %c0_8 = arith.constant 0 : index
    %c0_9 = arith.constant 0 : index
    %c0_10 = arith.constant 0 : index
    %6 = vector.load %arg4[%c0_8, %c0_9, %c0_10] : memref<5x6x4xf32, #tpu.memory_space<vmem>>, vector<1x6x4xf32>
    %7 = vector.shape_cast %6 : vector<1x6x4xf32> to vector<6x4xf32>
    %c0_11 = arith.constant 0 : index
    %c0_12 = arith.constant 0 : index
    %8 = vector.load %arg7[%c0_11, %c0_12] : memref<4x256xf32, #tpu.memory_space<vmem>>, vector<4x128xf32>
    %cst = arith.constant dense<0.000000e+00> : vector<6x128xf32>
    %9 = tpu.matmul %7, %8, %cst {dimension_numbers = #tpu.dot_dimension_numbers<[1], [0], [0], [1], [0, 0, 1, 1], [], []>} : vector<6x4xf32>, vector<4x128xf32>, vector<6x128xf32> -> vector<6x128xf32>
    %c1 = arith.constant 1 : index
    %c0_13 = arith.constant 0 : index
    %c0_14 = arith.constant 0 : index
    %10 = vector.load %arg4[%c1, %c0_13, %c0_14] : memref<5x6x4xf32, #tpu.memory_space<vmem>>, vector<1x6x4xf32>
    %11 = vector.shape_cast %10 : vector<1x6x4xf32> to vector<6x4xf32>
    %c0_15 = arith.constant 0 : index
    %c1_16 = arith.constant 1 : index
    %12 = vector.load %arg7[%c0_15, %c1_16] : memref<4x256xf32, #tpu.memory_space<vmem>>, vector<4x128xf32>
    %cst_17 = arith.constant dense<0.000000e+00> : vector<6x128xf32>
    %13 = tpu.matmul %11, %12, %cst_17 {dimension_numbers = #tpu.dot_dimension_numbers<[1], [0], [0], [1], [0, 0, 1, 1], [], []>} : vector<6x4xf32>, vector<4x128xf32>, vector<6x128xf32> -> vector<6x128xf32>
    %14 = arith.addf %9, %13 : vector<6x128xf32>
    %c2 = arith.constant 2 : index
    %c0_18 = arith.constant 0 : index
    %c0_19 = arith.constant 0 : index
    %15 = vector.load %arg4[%c2, %c0_18, %c0_19] : memref<5x6x4xf32, #tpu.memory_space<vmem>>, vector<1x6x4xf32>
    %16 = vector.shape_cast %15 : vector<1x6x4xf32> to vector<6x4xf32>
    %c0_20 = arith.constant 0 : index
    %c2_21 = arith.constant 2 : index
    %17 = vector.load %arg7[%c0_20, %c2_21] : memref<4x256xf32, #tpu.memory_space<vmem>>, vector<4x128xf32>
    %cst_22 = arith.constant dense<0.000000e+00> : vector<6x128xf32>
    %18 = tpu.matmul %16, %17, %cst_22 {dimension_numbers = #tpu.dot_dimension_numbers<[1], [0], [0], [1], [0, 0, 1, 1], [], []>} : vector<6x4xf32>, vector<4x128xf32>, vector<6x128xf32> -> vector<6x128xf32>
    %19 = arith.addf %14, %18 : vector<6x128xf32>
    %c3 = arith.constant 3 : index
    %c0_23 = arith.constant 0 : index
    %c0_24 = arith.constant 0 : index
    %20 = vector.load %arg4[%c3, %c0_23, %c0_24] : memref<5x6x4xf32, #tpu.memory_space<vmem>>, vector<1x6x4xf32>
    %21 = vector.shape_cast %20 : vector<1x6x4xf32> to vector<6x4xf32>
    %c0_25 = arith.constant 0 : index
    %c3_26 = arith.constant 3 : index
    %22 = vector.load %arg7[%c0_25, %c3_26] : memref<4x256xf32, #tpu.memory_space<vmem>>, vector<4x128xf32>
    %cst_27 = arith.constant dense<0.000000e+00> : vector<6x128xf32>
    %23 = tpu.matmul %21, %22, %cst_27 {dimension_numbers = #tpu.dot_dimension_numbers<[1], [0], [0], [1], [0, 0, 1, 1], [], []>} : vector<6x4xf32>, vector<4x128xf32>, vector<6x128xf32> -> vector<6x128xf32>
    %24 = arith.addf %19, %23 : vector<6x128xf32>
    %c4 = arith.constant 4 : index
    %c0_28 = arith.constant 0 : index
    %c0_29 = arith.constant 0 : index
    %25 = vector.load %arg4[%c4, %c0_28, %c0_29] : memref<5x6x4xf32, #tpu.memory_space<vmem>>, vector<1x6x4xf32>
    %26 = vector.shape_cast %25 : vector<1x6x4xf32> to vector<6x4xf32>
    %c0_30 = arith.constant 0 : index
    %c4_31 = arith.constant 4 : index
    %27 = vector.load %arg7[%c0_30, %c4_31] : memref<4x256xf32, #tpu.memory_space<vmem>>, vector<4x128xf32>
    %cst_32 = arith.constant dense<0.000000e+00> : vector<6x128xf32>
    %28 = tpu.matmul %26, %27, %cst_32 {dimension_numbers = #tpu.dot_dimension_numbers<[1], [0], [0], [1], [0, 0, 1, 1], [], []>} : vector<6x4xf32>, vector<4x128xf32>, vector<6x128xf32> -> vector<6x128xf32>
    %29 = arith.addf %24, %28 : vector<6x128xf32>
    %c0_33 = arith.constant 0 : index
    %c0_34 = arith.constant 0 : index
    %30 = vector.load %arg5[%c0_33, %c0_34] : memref<6x1xf32, #tpu.memory_space<vmem>>, vector<6x1xf32>
    %31 = vector.broadcast %30 : vector<6x1xf32> to vector<6x128xf32>
    %32 = arith.addf %29, %31 : vector<6x128xf32>
    %cst_35 = arith.constant 0.000000e+00 : f32
    %33 = vector.broadcast %cst_35 : f32 to vector<6x128xf32>
    %34 = arith.maximumf %32, %33 : vector<6x128xf32>
    %c0_36 = arith.constant 0 : index
    %c0_37 = arith.constant 0 : index
    %c0_38 = arith.constant 0 : index
    %35 = vector.load %arg6[%c0_36, %c0_37, %c0_38] : memref<1x6x128xf32, #tpu.memory_space<vmem>>, vector<1x6x128xf32>
    %36 = vector.shape_cast %35 : vector<1x6x128xf32> to vector<6x128xf32>
    %37 = vector.shape_cast %34 : vector<6x128xf32> to vector<1x6x128xf32>
    tpu.vector_store %arg6[%c0_36, %c0_37, %c0_38], %37 {strides = array<i32>} : memref<1x6x128xf32, #tpu.memory_space<vmem>>, vector<1x6x128xf32>,
    return
  }
  func.func @transform_0(%arg0: i32, %arg1: i32) -> (i32, i32, i32) {
    %c0_i32 = arith.constant 0 : i32
    %c0_i32_0 = arith.constant 0 : i32
    return %arg0, %c0_i32, %arg1 : i32, i32, i32
  }
  func.func @transform_1(%arg0: i32, %arg1: i32) -> (i32, i32, i32) {
    %c1_i32 = arith.constant 1 : i32
    %0 = arith.addi %arg1, %c1_i32 : i32
    %c1_i32_0 = arith.constant 1 : i32
    %1 = arith.muli %0, %c1_i32_0 : i32
    %c2_i32 = arith.constant 2 : i32
    %2 = arith.minsi %1, %c2_i32 : i32
    %c0_i32 = arith.constant 0 : i32
    %c0_i32_1 = arith.constant 0 : i32
    return %arg0, %c0_i32, %2 : i32, i32, i32
  }
  func.func @transform_2(%arg0: i32, %arg1: i32) -> (i32, i32, i32) {
    %c0_i32 = arith.constant 0 : i32
    %c0_i32_0 = arith.constant 0 : i32
    %c0_i32_1 = arith.constant 0 : i32
    %c0_i32_2 = arith.constant 0 : i32
    return %c0_i32, %c0_i32_0, %c0_i32_1 : i32, i32, i32
  }
  func.func @transform_3(%arg0: i32, %arg1: i32) -> (i32, i32) {
    %c0_i32 = arith.constant 0 : i32
    %c0_i32_0 = arith.constant 0 : i32
    %c0_i32_1 = arith.constant 0 : i32
    return %c0_i32, %c0_i32_0 : i32, i32
  }
  func.func @transform_4(%arg0: i32, %arg1: i32) -> (i32, i32, i32) {
    %c0_i32 = arith.constant 0 : i32
    %c0_i32_0 = arith.constant 0 : i32
    return %arg0, %c0_i32, %arg1 : i32, i32, i32
  }
}

</mosaic_0001>

<bundles_post_ra>
// kernel: conv_block.1
= control target key start
LH: loop header
LB: loop body
LE: loop exit
PB: predicated region body
PF: predicated region fallthrough
CT: control target
= control target key end

     0   :  { %s1009_s15 = smov 0   ;;  %s1011_s16 = smov 0   ;;  %s1100_s0 = inlined_call_operand.vmem [shape: f32[2,4,300], index: 0, kind: input, shape index: {}, may-alias: {0,1}]   ;;  %s1101_s1 = inlined_call_operand.vmem [shape: f32[2,4,300], index: 1, kind: input, shape index: {}, may-alias: {0,1}]   ;;  %s1102_s2 = inlined_call_operand.vmem [shape: f32[5,6,4], index: 2, kind: input, shape index: {}]   ;;  %s1103_s3 = inlined_call_operand.vmem [shape: f32[6,1], index: 3, kind: input, shape index: {}]   ;;  %s1104_s4 = inlined_call_operand.vmem [shape: f32[2,6,296], index: 4, kind: output, shape index: {}]  }
   0x1   :  { %s1013_s17 = smov 0   ;;  %s1015_s18 = smov 0  }
   0x2   :  { %s1017_s19 = smov 0  }
   0x3 LB: > { %s23_s20 = sadd.s32 1, %s967_s17  ;;  %s26_s21 = sadd.s32 1, %s971_s18  ;;  %s975_s19 = sphi %s1017_s19, %s14_s19   ;;  %s971_s18 = sphi %s1015_s18, %s1108_s18   ;;  %s967_s17 = sphi %s1013_s17, %s1107_s17   ;;  %s963_s16 = sphi %s1011_s16, %s1106_s16   ;;  %s959_s15 = sphi %s1009_s15, %s1105_s15  }
   0x4   : > { %p24_p0 = scmp.ge.s32.totalorder %s23_s20, 3  ;;  %p829_p1 = scmp.ge.s32.totalorder %s975_s19, 1 }
   0x5   : > { %p208_p2 = scmp.lt.s32.totalorder %s975_s19, 7 }
   0x6   : > { %s1110_s20 = smov (%p24_p0, %s23_s20), 0  ;;  %s1112_s21 = smov (!%p24_p0, %s26_s21), %s971_s18 }
   0x7   : > { %p209_p3 = pnand %p829_p1, %p208_p2  ;;  %p28_p4 = scmp.ge.s32.totalorder %s1112_s21, 2 }
   0x8   : > { %p251_p5 = scmp.lt.s32.totalorder (!%p209_p3), %s963_s16, 1  ;;  %p253_p6 = scmp.lt.s32.totalorder (!%p209_p3), %s959_s15, 2  ;;  %v977_v2 = vmov (!%p209_p3), 0.0   ;;  %vm302_vm0 = vcmask (!%p209_p3), 1043456   ;;  %vm978_vm1 = vmmov (!%p209_p3), 0   ;;  %vm298_vm2 = vcmask (!%p209_p3), 31744  }
   0x9   : > { %s1114_s21 = smov (%p28_p4, %s1112_s21), 0  ;;  %212 = sbr.rel (%p209_p3) target bundleno = 382 (0x17e), region = 36 }
   0xa   : > { %s259_s22 = sadd.s32 (!%p209_p3), 1, %s959_s15  ;;  %862 = vmatprep.subr.mxu0 (!%p209_p3), %v977_v2  ;;  %867 = vmatprep.subr.mxu1 (!%p209_p3), %v977_v2  ;;  %v285_v4 = vld [vmem:[%s1102_s2] sm:$0x3f] (!%p209_p3)  ;;  %s979_s10 = smov (!%p209_p3), 126   ;;  %v981_v7 = vmov (!%p209_p3), 0   ;;  %vm296_vm3 = vcmask (!%p209_p3), 1039360  }
   0xb   : > { %p260_p7 = scmp.lt.s32.totalorder (!%p209_p3), %s259_s22, 2  ;;  %864 = vmatprep.mubr.msk.f32.mxu0 (!%p209_p3), %vm978_vm1, %v977_v2  ;;  %869 = vmatprep.mubr.msk.f32.mxu1 (!%p209_p3), %vm978_vm1, %v977_v2  ;;  %s980_s11 = smov (!%p209_p3), 127   ;;  %v712_v8 = vld [vmem:[%s1103_s3] sm:$0x3f] (!%p209_p3)  ;;  %vm460_vm4 = vcmask (!%p209_p3), 1031168   ;;  %vm547_vm5 = vcmask (!%p209_p3), 1022976  }
   0xc   : > { %935 = vset.pattern.permute.xlu0 (!%p209_p3), %v981_v7  ;;  %s982_s12 = smov (!%p209_p3), 125   ;;  %s983_s13 = smov (!%p209_p3), 124   ;;  %v836_v13 = vld [vmem:[%s1102_s2 + $0x8] sm:$0x3f] (!%p209_p3)  ;;  %v841_v18 = vld [vmem:[%s1102_s2 + $0x10] sm:$0x3f] (!%p209_p3) }
   0xd   : > { %v844_v19 = vld [vmem:[%s1102_s2 + $0x18] sm:$0x3f] (!%p209_p3)  ;;  %vm634_vm6 = vcmask (!%p209_p3), 1014784   ;;  %v847_v23 = vld [vmem:[%s1102_s2 + $0x20] sm:$0x3f] (!%p209_p3) }
  0x10   : > { %s1116_s16 = smov (!%p251_p5, %s963_s16), 1  ;;  %s1118_s15 = smov (!%p253_p6, %s959_s15), 2 }
  0x11   : > { %s887_s23 = smul.u32 3, %s1116_s16  ;;  %s1120_s22 = smov (!%p260_p7, %s259_s22), 2 }
  0x12   : > { %s1122_s22 = smov (!%p260_p7, %s1120_s22), 2 }
  0x13   : > { %s1039_s24 = sadd.s32 %s887_s23, %s1118_s15  ;;  %s267_s29 = sadd.s32 %s887_s23, %s1122_s22 }
  0x14   : > { %s830_s25 = sshll.u32 %s1039_s24, 2  ;;  %s834_s30 = sshll.u32 %s267_s29, 2 }
  0x15   : > { %s258_s28 = scalar_lea.vmem %s1100_s0, %s830_s25  ;;  %s269_s7 = scalar_lea.vmem %s1101_s1, %s834_s30 }
  0x16   : > { %v281_v0 = vld [vmem:[%s258_s28] sm:$0xf]  ;;  %s835_s30 = sshll.u32 %s1039_s24, 3 }
  0x17   : > { %282 = vst [vmem:[#allocation2] sm:$0xf] %v281_v0  ;;  %v283_v1 = vld [vmem:[%s269_s7] sm:$0xf]  ;;  %s280_s7 = scalar_lea.vmem %s1104_s4, %s835_s30 }
  0x18   : > { %284 = vst [vmem:[#allocation2 + $0x4] sm:$0xf] %v283_v1 }
  0x1e   : > { %v286_v3 = vld [vmem:[#allocation2] sm:$0xf] }
  0x1f   : > { %868 = vmatpush3.msk.msra.mxu1 %vm302_vm0, %v286_v3  ;;  %v453_v5 = vld [vmem:[#allocation2] sm:$0xff] }
  0x20   : > { %877 = vmatprep.subr.mxu1 %v977_v2  ;;  %870 = vmatmul.mubr.msk.f32.vlgmr.msra.gmra.mrb[0].mxu1 %vm298_vm2, %v285_v4  ;;  %v455_v6 = vcombine.high %v453_v5, %v453_v5 }
  0x21   : > { %879 = vmatprep.mubr.msk.f32.mxu1 %vm978_vm1, %v977_v2  ;;  %456 = vrot.lane.b32.xlu1 %v453_v5, %s979_s10 }
  0x22   : > { %292 = vrot.lane.b32.xlu0 %v453_v5, %s980_s11 }
  0x25   : > { %458 = vrot.lane.b32.xlu1 %v455_v6, %s979_s10 }
  0x26   : > { %294 = vrot.lane.b32.xlu0 %v455_v6, %s980_s11 }
  0x29   : > { %545 = vrot.lane.b32.xlu1 %v455_v6, %s982_s12 }
  0x2a   : > { %543 = vrot.lane.b32.xlu0 %v453_v5, %s982_s12 }
  0x2d   : > { %632 = vrot.lane.b32.xlu1 %v455_v6, %s983_s13 }
  0x2e   : > { %630 = vrot.lane.b32.xlu0 %v453_v5, %s983_s13 }
  0x32   : > { %715 = vperm.xlu0 %935, %v712_v8  }
  0x93   : > { %v457_v9 = vpop.permute.xlu1 %456 }
  0x94   : > { %v293_v10 = vpop.permute.xlu0 %292 }
  0x97   : > { %v459_v11 = vpop.permute.xlu1 %458 }
  0x98   : > { %v295_v12 = vpop.permute.xlu0 %294  ;;  %v461_v15 = vsel %vm460_vm4, %v457_v9, %v459_v11 }
  0x99   : > { %v297_v14 = vsel %vm296_vm3, %v293_v10, %v295_v12 }
  0x9a   : > { %863 = vmatpush3.msk.msra.mxu0 %vm302_vm0, %v297_v14 }
  0x9b   : > { %872 = vmatprep.subr.mxu0 %v977_v2  ;;  %865 = vmatmul.mubr.msk.f32.vlgmr.msra.gmra.mrb[0].mxu0 %vm298_vm2, %v836_v13  ;;  %v546_v16 = vpop.permute.xlu1 %545 }
  0x9c   : > { %873 = vmatpush3.msk.msra.mxu0 %vm302_vm0, %v461_v15  ;;  %v544_v17 = vpop.permute.xlu0 %543  ;;  %874 = vmatprep.mubr.msk.f32.mxu0 %vm978_vm1, %v977_v2 }
  0x9d   : > { %v548_v20 = vsel %vm547_vm5, %v544_v17, %v546_v16  ;;  %882 = vmatprep.subr.mxu0 %v977_v2 }
  0x9e   : > { %878 = vmatpush3.msk.msra.mxu1 %vm302_vm0, %v548_v20 }
  0x9f   : > { %875 = vmatmul.mubr.msk.f32.vlgmr.msra.gmra.mrb[2].mxu0 %vm298_vm2, %v841_v18  ;;  %880 = vmatmul.mubr.msk.f32.vlgmr.msra.gmra.mrb[2].mxu1 %vm298_vm2, %v844_v19  ;;  %v633_v21 = vpop.permute.xlu1 %632 }
  0xa0   : > { %v631_v22 = vpop.permute.xlu0 %630  ;;  %884 = vmatprep.mubr.msk.f32.mxu0 %vm978_vm1, %v977_v2 }
  0xa1   : > { %v635_v24 = vsel %vm634_vm6, %v631_v22, %v633_v21 }
  0xa2   : > { %883 = vmatpush3.msk.msra.mxu0 %vm302_vm0, %v635_v24 }
  0xa3   : > { %885 = vmatmul.mubr.msk.f32.vlgmr.msra.gmra.mrb[4].mxu0 %vm298_vm2, %v847_v23 }
  0xb1   : > { %v716_v37 = vpop.permute.xlu0 %715 }
  0xf3   : > { %v447_v25 = vpop.f32.mrb[0].mxu1 }
  0xf4   : > { %v871_v26 = vpop.f32.mrb[1].mxu1 }
 0x16e   : > { %v371_v27 = vpop.f32.mrb[0].mxu0 }
 0x16f   : > { %v866_v28 = vpop.f32.mrb[1].mxu0  ;;  %v448_v29 = vadd.f32 %v447_v25, %v371_v27 }
 0x172   : > { %v533_v30 = vpop.f32.mrb[2].mxu0  ;;  %v620_v31 = vpop.f32.mrb[2].mxu1 }
 0x173   : > { %v537_v32 = vadd.f32 %v533_v30, %v448_v29  ;;  %v876_v33 = vpop.f32.mrb[3].mxu0  ;;  %v881_v34 = vpop.f32.mrb[3].mxu1 }
 0x175   : > { %v624_v35 = vadd.f32 %v620_v31, %v537_v32 }
 0x176   : > { %v707_v36 = vpop.f32.mrb[4].mxu0 }
 0x177   : > { %v711_v38 = vadd.f32 %v707_v36, %v624_v35  ;;  %v886_v39 = vpop.f32.mrb[5].mxu0 }
 0x179   : > { %v718_v40 = vadd.f32 %v716_v37, %v711_v38 }
 0x17b   : > { %v719_v41 = vmax.f32 %v718_v40, 0.0 }
 0x17d   : > { %720 = vst [vmem:[%s280_s7] sm:$0x3f] %v719_v41 }
 0x17e PF: > { %s14_s19 = sadd.s32 1, %s975_s19   ;;  %s1105_s15 = smov %s967_s17 }
 0x17f   : > { %p11_p8 = scmp.ge.s32.totalorder %s14_s19, 8   ;;  %s1106_s16 = smov %s971_s18 }
 0x180   : > { %s1107_s17 = smov %s1110_s20  ;;  %s1108_s18 = smov %s1114_s21 }
 0x181   :  { %13 = sbr.rel (!%p11_p8) target bundleno = 3 (0x3), region = 73 }

</bundles_post_ra>
